<compile_context>
chip_gen: v6e
topology: v6e:2x2x1
jax: 0.10.0
libtpu: 0.0.40
codegen_flags: <defaults>
</compile_context>

<pallas_src>
import functools

import jax
import jax.numpy as jnp
import numpy as np
from jax.experimental import pallas as pl
from jax.experimental.pallas import tpu as pltpu


def _round_up(n, m):
    return ((n + m - 1) // m) * m


def _pad_last(a, n):
    """Zero-pad the last dim of `a` up to n."""
    return jnp.pad(a, [(0, 0)] * (a.ndim - 1) + [(0, n - a.shape[-1])])


def _pad_first(a, n):
    """Zero-pad the first dim of `a` up to n."""
    return jnp.pad(a, [(0, n - a.shape[0])] + [(0, 0)] * (a.ndim - 1))


def _pick_bm(B, T, target_rows):
    """Largest bm dividing B with bm*T <= target_rows, subject to TPU tiling rules
    (block second-minor dims must be a multiple of 8 or the full extent)."""
    cand = max(1, min(B, target_rows // max(T, 1)))
    for bm in range(cand, 0, -1):
        if B % bm == 0 and (bm == B or bm % 8 == 0):
            return bm
    return B  # full-batch block is always a legal fallback


def _pie_kernel(tc_ref, x_ref, w1_ref, b1_ref, w2_ref, b2_ref,
                w3m_ref, w3c_ref, b3_ref, w4_ref, b4_ref, o_ref,
                *, trials_per_batch, batch_per_block, aggregation_fn):
    T = trials_per_batch
    bm = batch_per_block

    x = x_ref[...]                                   # (bm*T, D) rows of this batch block
    is_nan = jnp.isnan(x)
    xm = jnp.where(is_nan, 0.0, x)                   # torch.nan_to_num(x, nan=0.0)

    # trial_net == FCEmbedding(D -> H1 -> L), ReLU after every Linear (MXU matmuls).
    h = jnp.maximum(
        jnp.dot(xm, w1_ref[...], preferred_element_type=jnp.float32) + b1_ref[...], 0.0)
    e = jnp.maximum(
        jnp.dot(h, w2_ref[...], preferred_element_type=jnp.float32) + b2_ref[...], 0.0)

    # Zero out trials whose features are ALL NaN (matches (~is_nan.all(-1)).float()).
    valid = jnp.logical_not(jnp.all(is_nan, axis=-1, keepdims=True)).astype(jnp.float32)
    e = e * valid                                    # (bm*T, Lp)

    # Permutation-invariant aggregation: whole trial groups live in this block, so the
    # sum over trials is a simple in-block reshape + sublane reduction (no sel matmul,
    # no cross-step accumulator).
    Lp = e.shape[-1]
    combined = e.reshape(bm, T, Lp).sum(axis=1)      # (bm, Lp)

    tc = tc_ref[...]                                 # (bm, 1) trial counts (float32)
    if aggregation_fn == "mean":
        combined = combined * pl.reciprocal(tc, approx=True)

    # TODO(synk): the torch runtime assert `not isnan(combined_embedding).any()` has no
    # in-kernel equivalent and is omitted.

    # fc_subnet on concat([combined, trial_counts], dim=1), as the identical split matmul
    # combined @ W[:L] + trial_counts * W[L:].
    z = (jnp.dot(combined, w3m_ref[...], preferred_element_type=jnp.float32)
         + tc * w3c_ref[...] + b3_ref[...])
    h2 = jnp.maximum(z, 0.0)
    o_ref[...] = jnp.maximum(
        jnp.dot(h2, w4_ref[...], preferred_element_type=jnp.float32) + b4_ref[...], 0.0)


def permutation_invariant_embedding(x, params, *, aggregation_fn="sum",
                                    target_rows_per_block=1024):
    """x: (B, T, D) float32 with NaN-encoded missing trials. Returns (B, output_dim)."""
    assert aggregation_fn in ("sum", "mean")
    w1, b1, w2, b2, w3, b3, w4, b4 = params
    B, T, D = x.shape
    H1, L = w1.shape
    L2, H2 = w2.shape[1], w3.shape[1]
    assert L2 == w2.shape[1]
    L = w2.shape[1]
    OUT = w4.shape[1]

    # --- lane padding: zero-pad hidden/output feature dims to multiples of 128 so every
    # matmul operand / result and the HBM output slab are lane-dense. Zero rows/cols are
    # exact (ReLU(0)=0), so the forward pass is unchanged; the output is sliced back.
    H1p = _round_up(w1.shape[1], 128)
    Lp = _round_up(L, 128)
    H2p = _round_up(H2, 128)
    OUTp = _round_up(OUT, 128)

    w1p = _pad_last(w1, H1p)
    b1p = _pad_last(b1.reshape(1, -1), H1p)
    w2p = _pad_last(_pad_first(w2, H1p), Lp)
    b2p = _pad_last(b2.reshape(1, -1), Lp)
    w3m, w3c = w3[:L], w3[L:L + 1]                  # split of the concat-weight
    w3mp = _pad_last(_pad_first(w3m, Lp), H2p)
    w3cp = _pad_last(w3c, H2p)
    b3p = _pad_last(b3.reshape(1, -1), H2p)
    w4p = _pad_last(_pad_first(w4, H2p), OUTp)
    b4p = _pad_last(b4.reshape(1, -1), OUTp)

    # Trial counts — replicates the torch quirk isnan(x).sum(dim=1).reshape(-1)[:B]
    # exactly.  Entry b of that flattened (B, D) array only ever comes from batch rows
    # 0 .. ceil(B/D)-1, so we restrict the wrapper-side pass to that tiny prefix of x
    # instead of re-reading all of x from HBM.
    nb = -(-B // D)
    nan_counts = jnp.sum(jnp.isnan(x[:nb]), axis=1).reshape(-1)[:B].reshape(B, 1)
    trial_counts = jnp.float32(T) - nan_counts.astype(jnp.float32)

    bm = _pick_bm(B, T, target_rows_per_block)
    n_blocks = B // bm
    x_rows = x.reshape(B * T, D)                     # glue reshape (layout unchanged)

    kernel = functools.partial(
        _pie_kernel, trials_per_batch=T, batch_per_block=bm,
        aggregation_fn=aggregation_fn)

    grid_spec = pltpu.PrefetchScalarGridSpec(
        num_scalar_prefetch=0,
        grid=(n_blocks,),
        in_specs=[
            pl.BlockSpec((bm, 1), lambda i: (i, 0)),            # trial_counts block
            pl.BlockSpec((bm * T, D), lambda i: (i, 0)),        # x rows of this batch block
            pl.BlockSpec(w1p.shape, lambda i: (0, 0)),
            pl.BlockSpec(b1p.shape, lambda i: (0, 0)),
            pl.BlockSpec(w2p.shape, lambda i: (0, 0)),
            pl.BlockSpec(b2p.shape, lambda i: (0, 0)),
            pl.BlockSpec(w3mp.shape, lambda i: (0, 0)),
            pl.BlockSpec(w3cp.shape, lambda i: (0, 0)),
            pl.BlockSpec(b3p.shape, lambda i: (0, 0)),
            pl.BlockSpec(w4p.shape, lambda i: (0, 0)),
            pl.BlockSpec(b4p.shape, lambda i: (0, 0)),
        ],
        out_specs=pl.BlockSpec((bm, OUTp), lambda i: (i, 0)),   # per-block, lane-dense
    )
    out_padded = pl.pallas_call(
        kernel,
        out_shape=jax.ShapeDtypeStruct((B, OUTp), jnp.float32),
        grid_spec=grid_spec,
        compiler_params=pltpu.CompilerParams(
            dimension_semantics=("parallel",),       # independent batch blocks (v7x 2 TCs)
            vmem_limit_bytes=32 * 1024 * 1024,       # sized for v7x's smaller VMEM
        ),
    )(trial_counts, x_rows, w1p, b1p, w2p, b2p, w3mp, w3cp, b3p, w4p, b4p)
    return out_padded[:, :OUT]


def reference(x, params, *, aggregation_fn="sum"):
    """Pure-JAX transcription of the PyTorch forward pass (for verification)."""
    w1, b1, w2, b2, w3, b3, w4, b4 = params
    B, T, _ = x.shape
    nan_counts = jnp.sum(jnp.isnan(x), axis=1).reshape(-1)[:B].reshape(B, 1)
    trial_counts = jnp.float32(T) - nan_counts.astype(jnp.float32)
    is_nan = jnp.isnan(x)
    xm = jnp.where(is_nan, 0.0, x)
    h = jax.nn.relu(xm @ w1 + b1)
    e = jax.nn.relu(h @ w2 + b2)
    e = e * (~jnp.all(is_nan, axis=-1, keepdims=True)).astype(jnp.float32)
    combined = e.sum(axis=1)
    if aggregation_fn == "mean":
        combined = combined / trial_counts
    z = jax.nn.relu(jnp.concatenate([combined, trial_counts], axis=1) @ w3 + b3)
    return jax.nn.relu(z @ w4 + b4)


def init_linear(key, fan_in, fan_out):
    """Deterministic nn.Linear-style init; weight stored as (in, out)."""
    kw, kb = jax.random.split(key)
    bound = 1.0 / np.sqrt(fan_in)
    w = jax.random.uniform(kw, (fan_in, fan_out), jnp.float32, -bound, bound)
    b = jax.random.uniform(kb, (fan_out,), jnp.float32, -bound, bound)
    return w, b


if __name__ == "__main__":
    # Shapes implied by the module: x is (batch, permutation_dim, input_dim).
    B, T, D = 2, 8, 4          # batch, trials (permutation_dim), per-trial features
    H1, L = 32, 16             # trial_net hiddens, trial_net_output_dim
    H2, OUT = 32, 20           # fc_subnet num_hiddens, output_dim

    key = jax.random.PRNGKey(0)
    k_x, k1, k2, k3, k4 = jax.random.split(key, 5)

    w1, b1 = init_linear(k1, D, H1)        # trial_net layer 1
    w2, b2 = init_linear(k2, H1, L)        # trial_net layer 2
    w3, b3 = init_linear(k3, L + 1, H2)    # fc_subnet layer 1 (input = L + 1 trial count)
    w4, b4 = init_linear(k4, H2, OUT)      # fc_subnet layer 2
    params = (w1, b1, w2, b2, w3, b3, w4, b4)

    x = jax.random.normal(k_x, (B, T, D), jnp.float32)
    # Missing trials encoded as NaN (varying trial counts per batch element).
    x = x.at[0, 6:, :].set(jnp.nan)
    x = x.at[1, 7:, :].set(jnp.nan)

    out = permutation_invariant_embedding(x, params, aggregation_fn="sum")
    out = jax.block_until_ready(out)

    ref = reference(x, params, aggregation_fn="sum")
    np.testing.assert_allclose(np.asarray(out), np.asarray(ref), rtol=1e-2, atol=1e-2)
    assert out.shape == (B, OUT) and not bool(jnp.any(jnp.isnan(out)))
    print("KERNEL_OK")
</pallas_src>

<mosaic_0001>
module attributes {stable_mosaic.version = 11 : i64} {
  func.func @_pie_kernel(%arg0: i32, %arg1: memref<2x1xf32, #tpu.memory_space<vmem>>, %arg2: memref<16x4xf32, #tpu.memory_space<vmem>>, %arg3: memref<4x128xf32, #tpu.memory_space<vmem>>, %arg4: memref<1x128xf32, #tpu.memory_space<vmem>>, %arg5: memref<128x128xf32, #tpu.memory_space<vmem>>, %arg6: memref<1x128xf32, #tpu.memory_space<vmem>>, %arg7: memref<128x128xf32, #tpu.memory_space<vmem>>, %arg8: memref<1x128xf32, #tpu.memory_space<vmem>>, %arg9: memref<1x128xf32, #tpu.memory_space<vmem>>, %arg10: memref<128x128xf32, #tpu.memory_space<vmem>>, %arg11: memref<1x128xf32, #tpu.memory_space<vmem>>, %arg12: memref<2x128xf32, #tpu.memory_space<vmem>>) attributes {dimension_semantics = [#tpu.dimension_semantics<parallel>], iteration_bounds = array<i64: 1>, scalar_prefetch = 0 : i64, scratch_operands = 0 : i64, tpu.core_type = #tpu.core_type<tc>, window_params = [{transform_indices = @transform_0, window_bounds = array<i64: 2, 1>}, {transform_indices = @transform_1, window_bounds = array<i64: 16, 4>}, {pipeline_mode = #tpu.pipeline_mode<synchronous>, transform_indices = @transform_2, window_bounds = array<i64: 4, 128>}, {pipeline_mode = #tpu.pipeline_mode<synchronous>, transform_indices = @transform_3, window_bounds = array<i64: 1, 128>}, {pipeline_mode = #tpu.pipeline_mode<synchronous>, transform_indices = @transform_4, window_bounds = array<i64: 128, 128>}, {pipeline_mode = #tpu.pipeline_mode<synchronous>, transform_indices = @transform_5, window_bounds = array<i64: 1, 128>}, {pipeline_mode = #tpu.pipeline_mode<synchronous>, transform_indices = @transform_6, window_bounds = array<i64: 128, 128>}, {pipeline_mode = #tpu.pipeline_mode<synchronous>, transform_indices = @transform_7, window_bounds = array<i64: 1, 128>}, {pipeline_mode = #tpu.pipeline_mode<synchronous>, transform_indices = @transform_8, window_bounds = array<i64: 1, 128>}, {pipeline_mode = #tpu.pipeline_mode<synchronous>, transform_indices = @transform_9, window_bounds = array<i64: 128, 128>}, {pipeline_mode = #tpu.pipeline_mode<synchronous>, transform_indices = @transform_10, window_bounds = array<i64: 1, 128>}, {transform_indices = @transform_11, window_bounds = array<i64: 2, 128>}]} {
    %c0 = arith.constant 0 : index
    %c0_0 = arith.constant 0 : index
    %0 = vector.load %arg2[%c0, %c0_0] : memref<16x4xf32, #tpu.memory_space<vmem>>, vector<16x4xf32>
    %1 = arith.cmpf one, %0, %0 : vector<16x4xf32>
    %cst = arith.constant 0.000000e+00 : f32
    %2 = vector.broadcast %cst : f32 to vector<16x4xf32>
    %3 = arith.select %1, %2, %0 : vector<16x4xi1>, vector<16x4xf32>
    %c0_1 = arith.constant 0 : index
    %c0_2 = arith.constant 0 : index
    %4 = vector.load %arg3[%c0_1, %c0_2] : memref<4x128xf32, #tpu.memory_space<vmem>>, vector<4x128xf32>
    %cst_3 = arith.constant dense<0.000000e+00> : vector<16x128xf32>
    %5 = tpu.matmul %3, %4, %cst_3 {dimension_numbers = #tpu.dot_dimension_numbers<[1], [0], [0], [1], [0, 0, 1, 1], [], []>} : vector<16x4xf32>, vector<4x128xf32>, vector<16x128xf32> -> vector<16x128xf32>
    %c0_4 = arith.constant 0 : index
    %c0_5 = arith.constant 0 : index
    %6 = vector.load %arg4[%c0_4, %c0_5] : memref<1x128xf32, #tpu.memory_space<vmem>>, vector<1x128xf32>
    %7 = vector.broadcast %6 : vector<1x128xf32> to vector<16x128xf32>
    %8 = arith.addf %5, %7 : vector<16x128xf32>
    %cst_6 = arith.constant 0.000000e+00 : f32
    %9 = vector.broadcast %cst_6 : f32 to vector<16x128xf32>
    %10 = arith.maximumf %8, %9 : vector<16x128xf32>
    %c0_7 = arith.constant 0 : index
    %c0_8 = arith.constant 0 : index
    %11 = vector.load %arg5[%c0_7, %c0_8] : memref<128x128xf32, #tpu.memory_space<vmem>>, vector<128x128xf32>
    %cst_9 = arith.constant dense<0.000000e+00> : vector<16x128xf32>
    %12 = tpu.matmul %10, %11, %cst_9 {dimension_numbers = #tpu.dot_dimension_numbers<[1], [0], [0], [1], [0, 0, 1, 1], [], []>} : vector<16x128xf32>, vector<128x128xf32>, vector<16x128xf32> -> vector<16x128xf32>
    %c0_10 = arith.constant 0 : index
    %c0_11 = arith.constant 0 : index
    %13 = vector.load %arg6[%c0_10, %c0_11] : memref<1x128xf32, #tpu.memory_space<vmem>>, vector<1x128xf32>
    %14 = vector.broadcast %13 : vector<1x128xf32> to vector<16x128xf32>
    %15 = arith.addf %12, %14 : vector<16x128xf32>
    %cst_12 = arith.constant 0.000000e+00 : f32
    %16 = vector.broadcast %cst_12 : f32 to vector<16x128xf32>
    %17 = arith.maximumf %15, %16 : vector<16x128xf32>
    %cst_13 = arith.constant 1.000000e+00 : f32
    %cst_14 = arith.constant 0.000000e+00 : f32
    %18 = vector.broadcast %cst_13 : f32 to vector<16x4xf32>
    %19 = vector.broadcast %cst_14 : f32 to vector<16x4xf32>
    %20 = arith.select %1, %18, %19 : vector<16x4xi1>, vector<16x4xf32>
    %cst_15 = arith.constant dense<0x7F800000> : vector<16xf32>
    %21 = vector.multi_reduction <minimumf>, %20, %cst_15 [1] : vector<16x4xf32> to vector<16xf32>
    %cst_16 = arith.constant 0.000000e+00 : f32
    %22 = vector.broadcast %cst_16 : f32 to vector<16xf32>
    %23 = arith.cmpf ogt, %21, %22 : vector<16xf32>
    %24 = vector.shape_cast %23 : vector<16xi1> to vector<16x1xi1>
    %cst_17 = arith.constant dense<true> : vector<16x1xi1>
    %25 = arith.xori %24, %cst_17 : vector<16x1xi1>
    %26 = arith.extui %25 : vector<16x1xi1> to vector<16x1xi32>
    %27 = arith.sitofp %26 : vector<16x1xi32> to vector<16x1xf32>
    %28 = vector.broadcast %27 : vector<16x1xf32> to vector<16x128xf32>
    %29 = arith.mulf %17, %28 : vector<16x128xf32>
    %30 = vector.shape_cast %29 : vector<16x128xf32> to vector<2x8x128xf32>
    %cst_18 = arith.constant dense<0.000000e+00> : vector<2x128xf32>
    %31 = vector.multi_reduction <add>, %30, %cst_18 [1] : vector<2x8x128xf32> to vector<2x128xf32>
    %c0_19 = arith.constant 0 : index
    %c0_20 = arith.constant 0 : index
    %32 = vector.load %arg1[%c0_19, %c0_20] : memref<2x1xf32, #tpu.memory_space<vmem>>, vector<2x1xf32>
    %c0_21 = arith.constant 0 : index
    %c0_22 = arith.constant 0 : index
    %33 = vector.load %arg7[%c0_21, %c0_22] : memref<128x128xf32, #tpu.memory_space<vmem>>, vector<128x128xf32>
    %cst_23 = arith.constant dense<0.000000e+00> : vector<2x128xf32>
    %34 = tpu.matmul %31, %33, %cst_23 {dimension_numbers = #tpu.dot_dimension_numbers<[1], [0], [0], [1], [0, 0, 1, 1], [], []>} : vector<2x128xf32>, vector<128x128xf32>, vector<2x128xf32> -> vector<2x128xf32>
    %c0_24 = arith.constant 0 : index
    %c0_25 = arith.constant 0 : index
    %35 = vector.load %arg8[%c0_24, %c0_25] : memref<1x128xf32, #tpu.memory_space<vmem>>, vector<1x128xf32>
    %36 = vector.broadcast %32 : vector<2x1xf32> to vector<2x128xf32>
    %37 = vector.broadcast %35 : vector<1x128xf32> to vector<2x128xf32>
    %38 = arith.mulf %36, %37 : vector<2x128xf32>
    %39 = arith.addf %34, %38 : vector<2x128xf32>
    %c0_26 = arith.constant 0 : index
    %c0_27 = arith.constant 0 : index
    %40 = vector.load %arg9[%c0_26, %c0_27] : memref<1x128xf32, #tpu.memory_space<vmem>>, vector<1x128xf32>
    %41 = vector.broadcast %40 : vector<1x128xf32> to vector<2x128xf32>
    %42 = arith.addf %39, %41 : vector<2x128xf32>
    %cst_28 = arith.constant 0.000000e+00 : f32
    %43 = vector.broadcast %cst_28 : f32 to vector<2x128xf32>
    %44 = arith.maximumf %42, %43 : vector<2x128xf32>
    %c0_29 = arith.constant 0 : index
    %c0_30 = arith.constant 0 : index
    %45 = vector.load %arg10[%c0_29, %c0_30] : memref<128x128xf32, #tpu.memory_space<vmem>>, vector<128x128xf32>
    %cst_31 = arith.constant dense<0.000000e+00> : vector<2x128xf32>
    %46 = tpu.matmul %44, %45, %cst_31 {dimension_numbers = #tpu.dot_dimension_numbers<[1], [0], [0], [1], [0, 0, 1, 1], [], []>} : vector<2x128xf32>, vector<128x128xf32>, vector<2x128xf32> -> vector<2x128xf32>
    %c0_32 = arith.constant 0 : index
    %c0_33 = arith.constant 0 : index
    %47 = vector.load %arg11[%c0_32, %c0_33] : memref<1x128xf32, #tpu.memory_space<vmem>>, vector<1x128xf32>
    %48 = vector.broadcast %47 : vector<1x128xf32> to vector<2x128xf32>
    %49 = arith.addf %46, %48 : vector<2x128xf32>
    %cst_34 = arith.constant 0.000000e+00 : f32
    %50 = vector.broadcast %cst_34 : f32 to vector<2x128xf32>
    %51 = arith.maximumf %49, %50 : vector<2x128xf32>
    %c0_35 = arith.constant 0 : index
    %c0_36 = arith.constant 0 : index
    %52 = vector.load %arg12[%c0_35, %c0_36] : memref<2x128xf32, #tpu.memory_space<vmem>>, vector<2x128xf32>
    tpu.vector_store %arg12[%c0_35, %c0_36], %51 {strides = array<i32>} : memref<2x128xf32, #tpu.memory_space<vmem>>, vector<2x128xf32>,
    return
  }
  func.func @transform_0(%arg0: i32) -> (i32, i32) {
    %c0_i32 = arith.constant 0 : i32
    %c0_i32_0 = arith.constant 0 : i32
    return %arg0, %c0_i32 : i32, i32
  }
  func.func @transform_1(%arg0: i32) -> (i32, i32) {
    %c0_i32 = arith.constant 0 : i32
    %c0_i32_0 = arith.constant 0 : i32
    return %arg0, %c0_i32 : i32, i32
  }
  func.func @transform_2(%arg0: i32) -> (i32, i32) {
    %c0_i32 = arith.constant 0 : i32
    %c0_i32_0 = arith.constant 0 : i32
    %c0_i32_1 = arith.constant 0 : i32
    return %c0_i32, %c0_i32_0 : i32, i32
  }
  func.func @transform_3(%arg0: i32) -> (i32, i32) {
    %c0_i32 = arith.constant 0 : i32
    %c0_i32_0 = arith.constant 0 : i32
    %c0_i32_1 = arith.constant 0 : i32
    return %c0_i32, %c0_i32_0 : i32, i32
  }
  func.func @transform_4(%arg0: i32) -> (i32, i32) {
    %c0_i32 = arith.constant 0 : i32
    %c0_i32_0 = arith.constant 0 : i32
    %c0_i32_1 = arith.constant 0 : i32
    return %c0_i32, %c0_i32_0 : i32, i32
  }
  func.func @transform_5(%arg0: i32) -> (i32, i32) {
    %c0_i32 = arith.constant 0 : i32
    %c0_i32_0 = arith.constant 0 : i32
    %c0_i32_1 = arith.constant 0 : i32
    return %c0_i32, %c0_i32_0 : i32, i32
  }
  func.func @transform_6(%arg0: i32) -> (i32, i32) {
    %c0_i32 = arith.constant 0 : i32
    %c0_i32_0 = arith.constant 0 : i32
    %c0_i32_1 = arith.constant 0 : i32
    return %c0_i32, %c0_i32_0 : i32, i32
  }
  func.func @transform_7(%arg0: i32) -> (i32, i32) {
    %c0_i32 = arith.constant 0 : i32
    %c0_i32_0 = arith.constant 0 : i32
    %c0_i32_1 = arith.constant 0 : i32
    return %c0_i32, %c0_i32_0 : i32, i32
  }
  func.func @transform_8(%arg0: i32) -> (i32, i32) {
    %c0_i32 = arith.constant 0 : i32
    %c0_i32_0 = arith.constant 0 : i32
    %c0_i32_1 = arith.constant 0 : i32
    return %c0_i32, %c0_i32_0 : i32, i32
  }
  func.func @transform_9(%arg0: i32) -> (i32, i32) {
    %c0_i32 = arith.constant 0 : i32
    %c0_i32_0 = arith.constant 0 : i32
    %c0_i32_1 = arith.constant 0 : i32
    return %c0_i32, %c0_i32_0 : i32, i32
  }
  func.func @transform_10(%arg0: i32) -> (i32, i32) {
    %c0_i32 = arith.constant 0 : i32
    %c0_i32_0 = arith.constant 0 : i32
    %c0_i32_1 = arith.constant 0 : i32
    return %c0_i32, %c0_i32_0 : i32, i32
  }
  func.func @transform_11(%arg0: i32) -> (i32, i32) {
    %c0_i32 = arith.constant 0 : i32
    %c0_i32_0 = arith.constant 0 : i32
    return %arg0, %c0_i32 : i32, i32
  }
}

</mosaic_0001>

<bundles_post_ra>
// kernel: tpu_custom_call.1
= control target key start
LH: loop header
LB: loop body
LE: loop exit
PB: predicated region body
PF: predicated region fallthrough
CT: control target
= control target key end

     0   :  { %16 = vsyncpa [#allocation3], 0  ;;  %s965_s0 = inlined_call_operand.vmem [shape: f32[2,1], index: 0, kind: input, shape index: {}]   ;;  %s966_s1 = inlined_call_operand.vmem [shape: f32[16,4], index: 1, kind: input, shape index: {}]   ;;  %s967_s2 = inlined_call_operand.vmem [shape: f32[4,128], index: 2, kind: input, shape index: {}]   ;;  %s968_s3 = inlined_call_operand.vmem [shape: f32[1,128], index: 3, kind: input, shape index: {}]   ;;  %s969_s4 = inlined_call_operand.hbm [shape: f32[128,128], index: 4, kind: input, shape index: {}]   ;;  %s970_s5 = inlined_call_operand.vmem [shape: f32[1,128], index: 5, kind: input, shape index: {}]   ;;  %s971_s6 = inlined_call_operand.hbm [shape: f32[128,128], index: 6, kind: input, shape index: {}]   ;;  %s972_s7 = inlined_call_operand.vmem [shape: f32[1,128], index: 7, kind: input, shape index: {}]   ;;  %s973_s8 = inlined_call_operand.vmem [shape: f32[1,128], index: 8, kind: input, shape index: {}]   ;;  %s974_s9 = inlined_call_operand.hbm [shape: f32[128,128], index: 9, kind: input, shape index: {}]   ;;  %s975_s10 = inlined_call_operand.vmem [shape: f32[1,128], index: 10, kind: input, shape index: {}]   ;;  %s976_s11 = inlined_call_operand.hbm [shape: f32[2,128], index: 11, kind: output, shape index: {}]  }
   0x1   :  { %17 = vsyncpa [#allocation6], 0 }
   0x2   :  { %18 = vsyncpa [#allocation4], 0  ;;  %s810_s17 = smov [#allocation5]   ;;  %s811_s19 = smov [#allocation2]  }
   0x3   :  { %s46_s18 = sshll.u32 %s810_s17, 4  ;;  %s32_s20 = sshll.u32 %s811_s19, 4  ;;  %s47_s18 = int_to_ptr.vmem [resolvable:$true] %s46_s18  ;;  %s33_s20 = int_to_ptr.vmem [resolvable:$true] %s32_s20 }
   0x4   :  { %s732_s21 = scalar_lea.vmem %s47_s18, 2048  ;;  %p737_p1 = scmp.lt.s32.totalorder %s47_s18, %s47_s18 }
   0x5   :  { %p733_p0 = scmp.ne.s32.totalorder %s47_s18, %s732_s21  ;;  %p738_p2 = scmp.lt.s32.totalorder %s732_s21, %s732_s21 }
   0x7   :  { %p739_p3 = por %p738_p2, %p737_p1 }
   0x9   :  { %p740_p4 = pnand %p739_p3, %p733_p0 }
   0xb   :  { %743 = shalt.err (!%p740_p4)
}
   0xc   :  { %s812_s22 = smov 128   ;;  %s813_s23 = smov 8  }
   0xd   :  { %52 = dma.hbm_to_vmem [thread:$0]  %s971_s6, 2048, %s47_s18, [#allocation6], %s812_s22, %s812_s22, %s813_s23  }
   0xe   :  { %s752_s26 = scalar_lea.vmem %s33_s20, 2048  ;;  %p757_p6 = scmp.lt.s32.totalorder %s33_s20, %s33_s20 }
   0xf   :  { %p753_p5 = scmp.ne.s32.totalorder %s33_s20, %s752_s26  ;;  %p758_p7 = scmp.lt.s32.totalorder %s752_s26, %s752_s26 }
  0x11   :  { %p759_p8 = por %p758_p7, %p757_p6 }
  0x13   :  { %p760_p9 = pnand %p759_p8, %p753_p5 }
  0x15   :  { %763 = shalt.err (!%p760_p9)
}
  0x16   :  { %38 = dma.hbm_to_vmem [thread:$0]  %s969_s4, 2048, %s33_s20, [#allocation3], %s812_s22, %s812_s22, %s813_s23  }
  0x17   :  { %s814_s29 = smov [#allocation7]  }
  0x18   :  { %s62_s30 = sshll.u32 %s814_s29, 4  ;;  %s63_s30 = int_to_ptr.vmem [resolvable:$true] %s62_s30 }
  0x19   :  { %s772_s12 = scalar_lea.vmem %s63_s30, 2048  ;;  %p777_p11 = scmp.lt.s32.totalorder %s63_s30, %s63_s30 }
  0x1a   :  { %p773_p10 = scmp.ne.s32.totalorder %s63_s30, %s772_s12  ;;  %p778_p12 = scmp.lt.s32.totalorder %s772_s12, %s772_s12 }
  0x1c   :  { %p779_p13 = por %p778_p12, %p777_p11 }
  0x1e   :  { %p780_p0 = pnand %p779_p13, %p773_p10 }
  0x20   :  { %783 = shalt.err (!%p780_p0)
}
  0x21   :  { %68 = dma.hbm_to_vmem [thread:$0]  %s974_s9, 2048, %s63_s30, [#allocation6], %s812_s22, %s812_s22, %s813_s23  }
  0x22   :  { %804 = dma.done.wait [#allocation3], 2048  }
  0x23   :  { %805 = vsyncadd [#allocation3], 4294965248 }
  0x24   :  { %806 = dma.done.wait [#allocation6], 4096  }
  0x25   :  { %807 = vsyncadd [#allocation6], 4294963200  ;;  %vm101_vm0 = vcmask 1043456   ;;  %v86_v0 = vld [vmem:[%s967_s2] sm:$0xf]  ;;  %vm94_vm1 = vcmask 31744  }
  0x26   :  { %v80_v1 = vld [vmem:[%s966_s1] sm:$0xff]  ;;  %v81_v2 = vld [vmem:[%s966_s1 + $0x8] sm:$0xff]  ;;  %602 = vmatprep.subr.msk.mxu0 %vm101_vm0, %v86_v0  ;;  %v197_v3 = vld [vmem:[#allocation2 + $0x78] sm:$0xff]  ;;  %v815_v22 = vmov 0.0   ;;  %vm816_vm4 = vmmov 0   ;;  %v817_v52 = vmov 0  }
  0x27   :  { %vm82_vm2 = vcmp.ne.f32.partialorder %v80_v1, %v80_v1  ;;  %vm83_vm3 = vcmp.ne.f32.partialorder %v81_v2, %v81_v2  ;;  %v196_v4 = vld [vmem:[#allocation2 + $0x70] sm:$0xff]  ;;  %603 = vmatpush3.msk.msra.mxu0 %vm101_vm0, %v86_v0  ;;  %607 = vmatprep.subr.mxu1 %v197_v3  ;;  %v195_v7 = vld [vmem:[#allocation2 + $0x68] sm:$0xff]  ;;  %v194_v8 = vld [vmem:[#allocation2 + $0x60] sm:$0xff]  ;;  %vm818_vm6 = vmmov 1   ;;  %vm344_vm10 = vcmask 1041409   ;;  %s819_s25 = smov [#allocation8]  }
  0x28   :  { %v84_v5 = vsel %vm82_vm2, 0.0, %v80_v1  ;;  %v85_v6 = vsel %vm83_vm3, 0.0, %v81_v2  ;;  %608 = vmatpush3.msra.mxu1 %v197_v3  ;;  %v193_v9 = vld [vmem:[#allocation2 + $0x58] sm:$0xff]  ;;  %v192_v10 = vld [vmem:[#allocation2 + $0x50] sm:$0xff]  ;;  %v191_v11 = vld [vmem:[#allocation2 + $0x48] sm:$0xff]  ;;  %v282_v23 = vsel %vm82_vm2, 1.0, %v815_v22  ;;  %642 = vmatprep.subr.mxu0 %v815_v22 }
  0x29   :  { %604 = vmatprep.mubr.msk.f32.mxu0 %vm94_vm1, %v84_v5  ;;  %609 = vmatprep.subr.mxu1 %v196_v4  ;;  %v190_v12 = vld [vmem:[#allocation2 + $0x40] sm:$0xff]  ;;  %v189_v13 = vld [vmem:[#allocation2 + $0x38] sm:$0xff]  ;;  %v188_v14 = vld [vmem:[#allocation2 + $0x30] sm:$0xff]  ;;  %v283_v24 = vsel %vm83_vm3, 1.0, %v815_v22  ;;  %v284_v26 = vsel %vm94_vm1, %v282_v23, inf  ;;  %s527_s26 = sshll.u32 %s819_s25, 4  ;;  %s528_s26 = int_to_ptr.vmem [resolvable:$true] %s527_s26 }
  0x2a   :  { %605 = vmatmul.mubr.msk.f32.vlgmr.msra.gmra.mxu0 %vm94_vm1, %v85_v6  ;;  %610 = vmatpush3.msra.mxu1 %v196_v4  ;;  %v187_v15 = vld [vmem:[#allocation2 + $0x28] sm:$0xff]  ;;  %v186_v16 = vld [vmem:[#allocation2 + $0x20] sm:$0xff]  ;;  %v185_v17 = vld [vmem:[#allocation2 + $0x18] sm:$0xff]  ;;  %v287_v28 = vsel %vm94_vm1, %v283_v24, inf  ;;  %p789_p2 = scmp.lt.s32.totalorder %s528_s26, %s528_s26 }
  0x2b   :  { %611 = vmatprep.subr.mxu1 %v195_v7  ;;  %v184_v18 = vld [vmem:[#allocation2 + $0x10] sm:$0xff]  ;;  %v183_v19 = vld [vmem:[#allocation2 + $0x8] sm:$0xff]  ;;  %v182_v20 = vld [vmem:[#allocation2] sm:$0xff]  ;;  %285 = vmin.xlane.f32.xlu0 %v284_v26 }
  0x2c   :  { %612 = vmatpush3.msra.mxu1 %v195_v7  ;;  %v328_v21 = vld [vmem:[#allocation5 + $0x78] sm:$0xff]  ;;  %v327_v25 = vld [vmem:[#allocation5 + $0x70] sm:$0xff]  ;;  %v326_v27 = vld [vmem:[#allocation5 + $0x68] sm:$0xff]  ;;  %674 = vmatprep.mubr.msk.f32.mxu0 %vm816_vm4, %v815_v22 }
  0x2d   :  { %613 = vmatprep.subr.mxu1 %v194_v8  ;;  %643 = vmatpush3.msra.mxu0 %v328_v21  ;;  %v325_v29 = vld [vmem:[#allocation5 + $0x60] sm:$0xff]  ;;  %v324_v30 = vld [vmem:[#allocation5 + $0x58] sm:$0xff]  ;;  %v323_v38 = vld [vmem:[#allocation5 + $0x50] sm:$0xff] }
  0x2e   :  { %614 = vmatpush3.msra.mxu1 %v194_v8  ;;  %644 = vmatprep.subr.mxu0 %v815_v22  ;;  %v537_v31 = vld [vmem:[%s968_s3] ss:$0 sm:$0xff]  ;;  %v322_v39 = vld [vmem:[#allocation5 + $0x48] sm:$0xff]  ;;  %v320_v41 = vld [vmem:[#allocation5 + $0x38] sm:$0xff] }
  0x2f   :  { %615 = vmatprep.subr.mxu1 %v193_v9  ;;  %645 = vmatpush3.msra.mxu0 %v327_v25  ;;  %v321_v40 = vld [vmem:[#allocation5 + $0x40] sm:$0xff]  ;;  %v319_v42 = vld [vmem:[#allocation5 + $0x30] sm:$0xff]  ;;  %v318_v43 = vld [vmem:[#allocation5 + $0x28] sm:$0xff] }
  0x30   :  { %616 = vmatpush3.msra.mxu1 %v193_v9  ;;  %646 = vmatprep.subr.mxu0 %v815_v22  ;;  %v317_v44 = vld [vmem:[#allocation5 + $0x20] sm:$0xff]  ;;  %v316_v45 = vld [vmem:[#allocation5 + $0x18] sm:$0xff]  ;;  %v315_v46 = vld [vmem:[#allocation5 + $0x10] sm:$0xff] }
  0x31   :  { %617 = vmatprep.subr.mxu1 %v192_v10  ;;  %647 = vmatpush3.msra.mxu0 %v326_v27  ;;  %v314_v47 = vld [vmem:[#allocation5 + $0x8] sm:$0xff]  ;;  %v313_v48 = vld [vmem:[#allocation5] sm:$0xff]  ;;  %v441_v50 = vld [vmem:[#allocation7 + $0x78] sm:$0xff] }
  0x32   :  { %618 = vmatpush3.msra.mxu1 %v192_v10  ;;  %288 = vmin.xlane.f32.xlu0 %v287_v28  ;;  %v312_v49 = vld [vmem:[%s965_s0] sm:$0x3]  ;;  %v440_v51 = vld [vmem:[#allocation7 + $0x70] sm:$0xff]  ;;  %v439_v53 = vld [vmem:[#allocation7 + $0x68] sm:$0xff] }
  0x33   :  { %619 = vmatprep.subr.mxu1 %v191_v11  ;;  %648 = vmatprep.subr.mxu0 %v815_v22  ;;  %v438_v54 = vld [vmem:[#allocation7 + $0x60] sm:$0xff]  ;;  %v437_v55 = vld [vmem:[#allocation7 + $0x58] sm:$0xff]  ;;  %v436_v56 = vld [vmem:[#allocation7 + $0x50] sm:$0xff] }
  0x34   :  { %620 = vmatpush3.msra.mxu1 %v191_v11  ;;  %649 = vmatpush3.msra.mxu0 %v325_v29  ;;  %v435_v57 = vld [vmem:[#allocation7 + $0x48] sm:$0xff]  ;;  %v434_v58 = vld [vmem:[#allocation7 + $0x40] sm:$0xff]  ;;  %v433_v59 = vld [vmem:[#allocation7 + $0x38] sm:$0xff] }
  0x35   :  { %621 = vmatprep.subr.mxu1 %v190_v12  ;;  %650 = vmatprep.subr.mxu0 %v815_v22  ;;  %v432_v60 = vld [vmem:[#allocation7 + $0x30] sm:$0xff]  ;;  %v431_v61 = vld [vmem:[#allocation7 + $0x28] sm:$0xff]  ;;  %v430_v62 = vld [vmem:[#allocation7 + $0x20] sm:$0xff] }
  0x36   :  { %622 = vmatpush3.msra.mxu1 %v190_v12  ;;  %651 = vmatpush3.msra.mxu0 %v324_v30  ;;  %v541_v1 = vld [vmem:[%s970_s5] ss:$0 sm:$0xff]  ;;  %v429_v26 = vld [vmem:[#allocation7 + $0x18] sm:$0xff]  ;;  %v428_v27 = vld [vmem:[#allocation7 + $0x10] sm:$0xff] }
  0x37   :  { %623 = vmatprep.subr.mxu1 %v189_v13  ;;  %652 = vmatprep.subr.mxu0 %v815_v22  ;;  %v427_v28 = vld [vmem:[#allocation7 + $0x8] sm:$0xff]  ;;  %v426_v29 = vld [vmem:[#allocation7] sm:$0xff] }
  0x38   :  { %624 = vmatpush3.msra.mxu1 %v189_v13  ;;  %653 = vmatpush3.msra.mxu0 %v323_v38  ;;  %v544_v30 = vld [vmem:[%s972_s7] ss:$0 sm:$0xff]  ;;  %s784_s7 = scalar_lea.vmem %s528_s26, 32 }
  0x39   :  { %625 = vmatprep.subr.mxu1 %v188_v14  ;;  %654 = vmatprep.subr.mxu0 %v815_v22  ;;  %p785_p1 = scmp.ne.s32.totalorder %s528_s26, %s784_s7  ;;  %p790_p3 = scmp.lt.s32.totalorder %s784_s7, %s784_s7 }
  0x3a   :  { %626 = vmatpush3.msra.mxu1 %v188_v14  ;;  %655 = vmatpush3.msra.mxu0 %v322_v39 }
  0x3b   :  { %627 = vmatprep.subr.mxu1 %v187_v15  ;;  %656 = vmatprep.subr.mxu0 %v815_v22  ;;  %p791_p4 = por %p790_p3, %p789_p2 }
  0x3c   :  { %628 = vmatpush3.msra.mxu1 %v187_v15  ;;  %657 = vmatpush3.msra.mxu0 %v321_v40 }
  0x3d   :  { %629 = vmatprep.subr.mxu1 %v186_v16  ;;  %658 = vmatprep.subr.mxu0 %v815_v22  ;;  %p792_p5 = pnand %p791_p4, %p785_p1 }
  0x3e   :  { %630 = vmatpush3.msra.mxu1 %v186_v16  ;;  %659 = vmatpush3.msra.mxu0 %v320_v41 }
  0x3f   :  { %631 = vmatprep.subr.mxu1 %v185_v17  ;;  %660 = vmatprep.subr.mxu0 %v815_v22 }
  0x40   :  { %632 = vmatpush3.msra.mxu1 %v185_v17  ;;  %661 = vmatpush3.msra.mxu0 %v319_v42 }
  0x41   :  { %633 = vmatprep.subr.mxu1 %v184_v18  ;;  %662 = vmatprep.subr.mxu0 %v815_v22 }
  0x42   :  { %634 = vmatpush3.msra.mxu1 %v184_v18  ;;  %663 = vmatpush3.msra.mxu0 %v318_v43 }
  0x43   :  { %635 = vmatprep.subr.mxu1 %v183_v19  ;;  %664 = vmatprep.subr.mxu0 %v815_v22 }
  0x44   :  { %636 = vmatpush3.msra.mxu1 %v183_v19  ;;  %665 = vmatpush3.msra.mxu0 %v317_v44 }
  0x45   :  { %637 = vmatprep.subr.mxu1 %v182_v20  ;;  %666 = vmatprep.subr.mxu0 %v815_v22 }
  0x46   :  { %638 = vmatpush3.msra.mxu1 %v182_v20  ;;  %667 = vmatpush3.msra.mxu0 %v316_v45 }
  0x47   :  { %677 = vmatprep.subr.mxu1 %v815_v22  ;;  %668 = vmatprep.subr.mxu0 %v815_v22 }
  0x48   :  { %669 = vmatpush3.msra.mxu0 %v315_v46  ;;  %722 = vset.pattern.permute.xlu1 %v817_v52 }
  0x49   :  { %670 = vmatprep.subr.mxu0 %v815_v22  ;;  %332 = vperm.xlu1 %722, %v312_v49  }
  0x4a   :  { %671 = vmatpush3.msra.mxu0 %v314_v47  ;;  %723 = vset.pattern.permute.xlu0 %v817_v52 }
  0x4b   :  { %672 = vmatprep.subr.mxu0 %v815_v22 }
  0x4c   :  { %673 = vmatpush3.msra.mxu0 %v313_v48 }
  0xb4   :  { %v286_v63 = vpop.xlane.xlu0 %285 }
  0xb5   :  { %vm290_vm8 = vcmp.gt.f32.partialorder %v286_v63, 0.0 }
  0xb6   :  { %vm292_vm9 = vmxor %vm290_vm8, %vm818_vm6 }
  0xb7   :  { %v542_v10 = vsel %vm292_vm9, 1.0, %v815_v22 }
  0xbb   :  { %v289_v0 = vpop.xlane.xlu0 %288 }
  0xbc   :  { %vm291_vm5 = vcmp.gt.f32.partialorder %v289_v0, 0.0 }
  0xbd   :  { %vm293_vm7 = vmxor %vm291_vm5, %vm818_vm6 }
  0xbe   :  { %v543_v4 = vsel %vm293_vm7, 1.0, %v815_v22 }
  0xea   :  { %v606_v32 = vpop.f32.mrf.mxu0 }
  0xeb   :  { %v177_v33 = vadd.f32 %v606_v32, %v537_v31 }
  0xec   :  { %v171_v34 = vpop.f32.mrf.mxu0 }
  0xed   :  { %v172_v35 = vadd.f32 %v537_v31, %v171_v34  ;;  %v181_v37 = vmax.f32 %v177_v33, 0.0  ;;  %v333_v31 = vpop.permute.xlu1 %332  ;;  %v545_v34 = vld [vmem:[%s973_s8] ss:$0 sm:$0xff] }
  0xee   :  { %v341_v32 = vmul.f32 %v544_v30, %v333_v31 }
  0xef   :  { %v180_v36 = vmax.f32 %v172_v35, 0.0 }
  0xf1   :  { %639 = vmatprep.mubr.f32.mxu1 %v180_v36 }
  0xf2   :  { %640 = vmatmul.mubr.f32.vlgmr.msra.gmra.mxu1 %v181_v37 }
  0xf3   :  { %709 = vmatprep.mubr.msk.f32.mxu1 %vm816_vm4, %v815_v22  ;;  %678 = vmatpush3.msra.mxu1 %v441_v50 }
  0xf4   :  { %679 = vmatprep.subr.mxu1 %v815_v22 }
  0xf5   :  { %680 = vmatpush3.msra.mxu1 %v440_v51 }
  0xf6   :  { %681 = vmatprep.subr.mxu1 %v815_v22 }
  0xf7   :  { %682 = vmatpush3.msra.mxu1 %v439_v53 }
  0xf8   :  { %683 = vmatprep.subr.mxu1 %v815_v22 }
  0xf9   :  { %684 = vmatpush3.msra.mxu1 %v438_v54 }
  0xfa   :  { %685 = vmatprep.subr.mxu1 %v815_v22 }
  0xfb   :  { %686 = vmatpush3.msra.mxu1 %v437_v55 }
  0xfc   :  { %687 = vmatprep.subr.mxu1 %v815_v22 }
  0xfd   :  { %688 = vmatpush3.msra.mxu1 %v436_v56 }
  0xfe   :  { %689 = vmatprep.subr.mxu1 %v815_v22 }
  0xff   :  { %690 = vmatpush3.msra.mxu1 %v435_v57 }
 0x100   :  { %691 = vmatprep.subr.mxu1 %v815_v22 }
 0x101   :  { %692 = vmatpush3.msra.mxu1 %v434_v58 }
 0x102   :  { %693 = vmatprep.subr.mxu1 %v815_v22 }
 0x103   :  { %694 = vmatpush3.msra.mxu1 %v433_v59 }
 0x104   :  { %695 = vmatprep.subr.mxu1 %v815_v22 }
 0x105   :  { %696 = vmatpush3.msra.mxu1 %v432_v60 }
 0x106   :  { %697 = vmatprep.subr.mxu1 %v815_v22 }
 0x107   :  { %698 = vmatpush3.msra.mxu1 %v431_v61 }
 0x108   :  { %699 = vmatprep.subr.mxu1 %v815_v22 }
 0x109   :  { %700 = vmatpush3.msra.mxu1 %v430_v62 }
 0x10a   :  { %701 = vmatprep.subr.mxu1 %v815_v22 }
 0x10b   :  { %702 = vmatpush3.msra.mxu1 %v429_v26 }
 0x10c   :  { %703 = vmatprep.subr.mxu1 %v815_v22 }
 0x10d   :  { %704 = vmatpush3.msra.mxu1 %v428_v27 }
 0x10e   :  { %705 = vmatprep.subr.mxu1 %v815_v22 }
 0x10f   :  { %706 = vmatpush3.msra.mxu1 %v427_v28 }
 0x110   :  { %707 = vmatprep.subr.mxu1 %v815_v22  ;;  %v546_v22 = vld [vmem:[%s975_s10] ss:$0 sm:$0xff] }
 0x111   :  { %708 = vmatpush3.msra.mxu1 %v426_v29 }
 0x1b2   :  { %v641_v2 = vpop.f32.mrf.mxu1 }
 0x1b3   :  { %v277_v3 = vadd.f32 %v641_v2, %v541_v1 }
 0x1b4   :  { %v271_v5 = vpop.f32.mrf.mxu1 }
 0x1b5   :  { %v281_v6 = vmax.f32 %v277_v3, 0.0  ;;  %v272_v7 = vadd.f32 %v541_v1, %v271_v5 }
 0x1b7   :  { %v299_v8 = vmul.f32 %v543_v4, %v281_v6  ;;  %v280_v9 = vmax.f32 %v272_v7, 0.0 }
 0x1b9   :  { %v306_v11 = vrot.slane %v299_v8, 4  ;;  %v298_v12 = vmul.f32 %v542_v10, %v280_v9 }
 0x1bb   :  { %v307_v13 = vadd.f32 %v306_v11, %v299_v8  ;;  %v300_v14 = vrot.slane %v298_v12, 4 }
 0x1bd   :  { %v308_v15 = vrot.slane %v307_v13, 2  ;;  %v301_v16 = vadd.f32 %v300_v14, %v298_v12 }
 0x1bf   :  { %v309_v17 = vadd.f32 %v308_v15, %v307_v13  ;;  %v302_v18 = vrot.slane %v301_v16, 2 }
 0x1c1   :  { %v310_v19 = vrot.slane %v309_v17, 1  ;;  %v303_v20 = vadd.f32 %v302_v18, %v301_v16 }
 0x1c3   :  { %v304_v21 = vrot.slane %v303_v20, 1  ;;  %v311_v24 = vadd.f32 %v310_v19, %v309_v17 }
 0x1c5   :  { %v305_v23 = vadd.f32 %v304_v21, %v303_v20 }
 0x1c7   :  { %v345_v25 = vsel %vm344_vm10, %v311_v24, %v305_v23 }
 0x1c8   :  { %675 = vmatmul.mubr.f32.vlgmr.msra.gmra.mxu0 %v345_v25 }
 0x288   :  { %v413_v33 = vpop.f32.mrf.mxu0 }
 0x289   :  { %v414_v35 = vadd.f32 %v413_v33, %v341_v32 }
 0x28a   :  { %v676_v36 = vpop.f32.mrf.mxu0 }
 0x28b   :  { %v424_v37 = vadd.f32 %v545_v34, %v414_v35 }
 0x28d   :  { %v425_v38 = vmax.f32 %v424_v37, 0.0 }
 0x28f   :  { %710 = vmatmul.mubr.f32.vlgmr.msra.gmra.mxu1 %v425_v38 }
 0x34f   :  { %v515_v39 = vpop.f32.mrf.mxu1 }
 0x350   :  { %v516_v40 = vadd.f32 %v546_v22, %v515_v39 }
 0x351   :  { %v711_v41 = vpop.f32.mrf.mxu1 }
 0x352   :  { %v519_v42 = vmax.f32 %v516_v40, 0.0 }
 0x354   :  { %520 = vst [vmem:[#allocation8] sm:$0x3] %v519_v42 }
 0x355   :  { %795 = shalt.err (!%p792_p5)
}
 0x356   :  { %530 = dma.vmem_to_hbm [thread:$0]  %s528_s26, 32, %s976_s11, [#allocation4]  }
 0x357   :  { %808 = dma.done.wait [#allocation4], 32  }
 0x358   :  { %809 = vsyncadd [#allocation4], 4294967264 }
 0x359   :  { %534 = vsyncpa [#allocation3], 1 }
 0x35a   :  { %535 = vsyncpa [#allocation6], 1 }
 0x35b   :  { %536 = vsyncpa [#allocation4], 1 }

</bundles_post_ra>
